<compile_context>
chip_gen: v7x
topology: tpu7x:2x2x1
jax: 0.10.0
libtpu: 0.0.40
codegen_flags: <defaults>
</compile_context>

<pallas_src>
import jax
import jax.numpy as jnp
from jax.experimental import pallas as pl
from jax.experimental.pallas import tpu as pltpu

LANES = 128
MAX_ROWS_TILE = 2048          # 2048*128*4B = 1 MiB f32 per input block (safe on v5e)
TARGET_BLOCK_BYTES = 1 << 20  # aim for ~1 MiB per input per grid step


def _dsm_kernel(std_ref, pred_ref, z_ref, out_ref):
    # std_ref : (Bt, 1, 1) f32;  pred_ref / z_ref : (Bt, rows_tile, 128) native dtype
    s = std_ref[...]
    p = pred_ref[...].astype(jnp.float32)
    zt = z_ref[...].astype(jnp.float32)
    err = s * p + zt                          # fused std*score + z (VPU)
    sq = err * err
    # per-tile partial: reduce over batch-tile and sublane axes -> (128,) lanes
    out_ref[...] = jnp.sum(sq, axis=(0, 1))[None, None, None, :]


def denoising_score_matching_loss(std, pred_score, z):
    """std: scalar, [B] or [B,1,...]; pred_score, z: [B, C, H, W]. Returns scalar f32."""
    B = pred_score.shape[0]
    pred2d = pred_score.reshape(B, -1)        # keep native dtype (bf16 ok)
    z2d = z.reshape(B, -1)
    F = pred2d.shape[1]
    itemsize = pred2d.dtype.itemsize

    # ---- lane dimension: only pad when F is not already a multiple of 128 ----
    if F % LANES != 0:
        # TODO(synk): the ragged lane tail could be masked in-kernel instead of
        # paying a full-tensor pad copy; zero padding is numerically exact here
        # (err = std*0 + 0 = 0).
        Fp = ((F + LANES - 1) // LANES) * LANES
        pred2d = jnp.pad(pred2d, ((0, 0), (0, Fp - F)))
        z2d = jnp.pad(z2d, ((0, 0), (0, Fp - F)))
        F = Fp
    rows = F // LANES

    # ---- row tiling: full extent if small, else a multiple-of-8 divisor ----
    if rows <= MAX_ROWS_TILE:
        rows_tile = rows
    else:
        rows_tile = None
        for d in range(MAX_ROWS_TILE, 7, -1):
            if d % 8 == 0 and rows % d == 0:
                rows_tile = d
                break
        if rows_tile is None:
            rows_tile = MAX_ROWS_TILE
            pad_rows = (-rows) % rows_tile
            pred2d = jnp.pad(pred2d, ((0, 0), (0, pad_rows * LANES)))
            z2d = jnp.pad(z2d, ((0, 0), (0, pad_rows * LANES)))
            rows += pad_rows
    nrt = rows // rows_tile

    # ---- batch fusion: pack several small samples into one ~1 MiB block ----
    if nrt == 1:
        sample_bytes = max(1, rows * LANES * itemsize)
        bt_cap = max(1, TARGET_BLOCK_BYTES // sample_bytes)
        bt = 1
        for d in range(min(B, bt_cap), 0, -1):
            if B % d == 0:
                bt = d
                break
    else:
        bt = 1
    nbt = B // bt

    pred3d = pred2d.reshape(B, rows, LANES)
    z3d = z2d.reshape(B, rows, LANES)

    # ---- per-sample sigma as a (B,1,1) f32 broadcast operand ----
    # TODO(synk): a genuinely per-channel / per-element std is reduced to the
    # per-sample scalar std[b, 0, ...]; the module's usual std is [B] or [B,1,1,1].
    std_arr = jnp.asarray(std, jnp.float32)
    if std_arr.size == 1:
        std_b = jnp.broadcast_to(std_arr.reshape(()), (B,))
    else:
        std_b = std_arr.reshape(B, -1)[:, 0]
    std3d = std_b.reshape(B, 1, 1)

    grid = (nbt, nrt)
    bytes_accessed = ((pred3d.size + z3d.size) * itemsize
                      + B * 4 + nbt * nrt * LANES * 4)

    partials = pl.pallas_call(
        _dsm_kernel,
        out_shape=jax.ShapeDtypeStruct((nbt, nrt, 1, LANES), jnp.float32),
        grid_spec=pltpu.PrefetchScalarGridSpec(
            num_scalar_prefetch=0,
            grid=grid,
            in_specs=[
                pl.BlockSpec((bt, 1, 1), lambda bi, ri: (bi, 0, 0)),           # std
                pl.BlockSpec((bt, rows_tile, LANES), lambda bi, ri: (bi, ri, 0)),  # pred
                pl.BlockSpec((bt, rows_tile, LANES), lambda bi, ri: (bi, ri, 0)),  # z
            ],
            out_specs=pl.BlockSpec((1, 1, 1, LANES),
                                   lambda bi, ri: (bi, ri, 0, 0)),
        ),
        compiler_params=pltpu.CompilerParams(
            dimension_semantics=("parallel", "parallel")),
        cost_estimate=pl.CostEstimate(
            flops=4 * B * rows * LANES,
            transcendentals=0,
            bytes_accessed=bytes_accessed),
    )(std3d, pred3d, z3d)

    # 0.5 * sum(err^2) / B  (tiny wrapper-side reduction over nbt*nrt*128 partials)
    return 0.5 * jnp.sum(partials) / jnp.float32(B)


def _reference_loss(std, pred_score, z):
    B = pred_score.shape[0]
    err = jnp.asarray(std, jnp.float32).reshape(B, 1, 1, 1) * pred_score + z
    losses = jnp.square(jnp.abs(err))
    return jnp.mean(0.5 * jnp.sum(losses.reshape(B, -1), axis=-1))


if __name__ == "__main__":
    # Small deterministic example consistent with the module: x ~ [B, C, H, W]
    B, C, H, W = 2, 4, 16, 16
    key = jax.random.PRNGKey(0)
    k1, k2, k3 = jax.random.split(key, 3)
    pred_score = jax.random.normal(k1, (B, C, H, W), dtype=jnp.float32)
    z = jax.random.normal(k2, (B, C, H, W), dtype=jnp.float32)
    std = jax.random.uniform(k3, (B,), dtype=jnp.float32, minval=0.1, maxval=2.0)

    loss = denoising_score_matching_loss(std, pred_score, z)
    loss = jax.block_until_ready(loss)

    ref = _reference_loss(std, pred_score, z)
    assert jnp.allclose(loss, ref, rtol=1e-5, atol=1e-5), (loss, ref)
    print("KERNEL_OK")
</pallas_src>

<mosaic_0001>
module attributes {stable_mosaic.version = 11 : i64} {
  func.func @_dsm_kernel(%arg0: i32, %arg1: i32, %arg2: memref<2x1x1xf32, #tpu.memory_space<vmem>>, %arg3: memref<2x8x128xf32, #tpu.memory_space<vmem>>, %arg4: memref<2x8x128xf32, #tpu.memory_space<vmem>>, %arg5: memref<1x1x1x128xf32, #tpu.memory_space<vmem>>) attributes {dimension_semantics = [#tpu.dimension_semantics<parallel>, #tpu.dimension_semantics<parallel>], iteration_bounds = array<i64: 1, 1>, scalar_prefetch = 0 : i64, scratch_operands = 0 : i64, tpu.core_type = #tpu.core_type<tc>, window_params = [{transform_indices = @transform_0, window_bounds = array<i64: 2, 1, 1>}, {transform_indices = @transform_1, window_bounds = array<i64: 2, 8, 128>}, {transform_indices = @transform_2, window_bounds = array<i64: 2, 8, 128>}, {transform_indices = @transform_3, window_bounds = array<i64: 1, 1, 1, 128>}]} {
    %c0 = arith.constant 0 : index
    %c0_0 = arith.constant 0 : index
    %c0_1 = arith.constant 0 : index
    %0 = vector.load %arg2[%c0, %c0_0, %c0_1] : memref<2x1x1xf32, #tpu.memory_space<vmem>>, vector<2x1x1xf32>
    %c0_2 = arith.constant 0 : index
    %c0_3 = arith.constant 0 : index
    %c0_4 = arith.constant 0 : index
    %1 = vector.load %arg3[%c0_2, %c0_3, %c0_4] : memref<2x8x128xf32, #tpu.memory_space<vmem>>, vector<2x8x128xf32>
    %c0_5 = arith.constant 0 : index
    %c0_6 = arith.constant 0 : index
    %c0_7 = arith.constant 0 : index
    %2 = vector.load %arg4[%c0_5, %c0_6, %c0_7] : memref<2x8x128xf32, #tpu.memory_space<vmem>>, vector<2x8x128xf32>
    %3 = vector.broadcast %0 : vector<2x1x1xf32> to vector<2x8x128xf32>
    %4 = arith.mulf %3, %1 : vector<2x8x128xf32>
    %5 = arith.addf %4, %2 : vector<2x8x128xf32>
    %6 = arith.mulf %5, %5 : vector<2x8x128xf32>
    %cst = arith.constant dense<0.000000e+00> : vector<128xf32>
    %7 = vector.multi_reduction <add>, %6, %cst [0, 1] : vector<2x8x128xf32> to vector<128xf32>
    %8 = vector.shape_cast %7 : vector<128xf32> to vector<1x1x1x128xf32>
    %c0_8 = arith.constant 0 : index
    %c0_9 = arith.constant 0 : index
    %c0_10 = arith.constant 0 : index
    %c0_11 = arith.constant 0 : index
    %9 = vector.load %arg5[%c0_8, %c0_9, %c0_10, %c0_11] : memref<1x1x1x128xf32, #tpu.memory_space<vmem>>, vector<1x1x1x128xf32>
    tpu.vector_store %arg5[%c0_8, %c0_9, %c0_10, %c0_11], %8 {strides = array<i32>} : memref<1x1x1x128xf32, #tpu.memory_space<vmem>>, vector<1x1x1x128xf32>,
    return
  }
  func.func @transform_0(%arg0: i32, %arg1: i32) -> (i32, i32, i32) {
    %c0_i32 = arith.constant 0 : i32
    %c0_i32_0 = arith.constant 0 : i32
    %c0_i32_1 = arith.constant 0 : i32
    return %arg0, %c0_i32, %c0_i32_0 : i32, i32, i32
  }
  func.func @transform_1(%arg0: i32, %arg1: i32) -> (i32, i32, i32) {
    %c0_i32 = arith.constant 0 : i32
    %c0_i32_0 = arith.constant 0 : i32
    return %arg0, %arg1, %c0_i32 : i32, i32, i32
  }
  func.func @transform_2(%arg0: i32, %arg1: i32) -> (i32, i32, i32) {
    %c0_i32 = arith.constant 0 : i32
    %c0_i32_0 = arith.constant 0 : i32
    return %arg0, %arg1, %c0_i32 : i32, i32, i32
  }
  func.func @transform_3(%arg0: i32, %arg1: i32) -> (i32, i32, i32, i32) {
    %c0_i32 = arith.constant 0 : i32
    %c0_i32_0 = arith.constant 0 : i32
    %c0_i32_1 = arith.constant 0 : i32
    return %arg0, %arg1, %c0_i32, %c0_i32_0 : i32, i32, i32, i32
  }
}

</mosaic_0001>

<bundles_post_ra>
// kernel: tpu_custom_call.1
= control target key start
LH: loop header
LB: loop body
LE: loop exit
PB: predicated region body
PF: predicated region fallthrough
CT: control target
= control target key end

     0   :  { %8 = vsyncpa [#allocation3], 0  ;;  %s246_s0 = inlined_call_operand.vmem [shape: f32[2,1,1], index: 0, kind: input, shape index: {}]   ;;  %s247_s1 = inlined_call_operand.hbm [shape: f32[2,8,128], index: 1, kind: input, shape index: {}]   ;;  %s248_s2 = inlined_call_operand.hbm [shape: f32[2,8,128], index: 2, kind: input, shape index: {}]   ;;  %s249_s3 = inlined_call_operand.hbm [shape: f32[1,1,1,128], index: 3, kind: output, shape index: {}]  }
   0x1   :  { %9 = vsyncpa [#allocation6], 0 }
   0x2   :  { %10 = vsyncpa [#allocation4], 0  ;;  %s178_s12 = smov [#allocation2]   ;;  %s106_s16 = scalar_lea.hbm %s247_s1, 256 }
   0x3   :  { %s18_s13 = sshll.u32 %s178_s12, 4  ;;  %p107_p0 = scmp.ne.s32.totalorder %s247_s1, %s106_s16  ;;  %s19_s13 = int_to_ptr.vmem [resolvable:$true] %s18_s13 }
   0x4   :  { %p110_p1 = scmp.lt.u32.totalorder %s106_s16, %s247_s1 }
   0x6   :  { %p112_p2 = pnand %p110_p1, %p107_p0 }
   0x8   :  { %115 = shalt.err (!%p112_p2)
}
   0x9   :  { %s116_s21 = scalar_lea.vmem %s19_s13, 256  ;;  %p121_p4 = scmp.lt.s32.totalorder %s19_s13, %s19_s13 }
   0xa   :  { %p117_p3 = scmp.ne.s32.totalorder %s19_s13, %s116_s21  ;;  %p122_p5 = scmp.lt.s32.totalorder %s116_s21, %s116_s21 }
   0xc   :  { %p123_p6 = por %p122_p5, %p121_p4 }
   0xe   :  { %p124_p7 = pnand %p123_p6, %p117_p3 }
  0x10   :  { %127 = shalt.err (!%p124_p7)
}
  0x11   :  { %s179_s22 = smov 128   ;;  %s180_s23 = smov 8  }
  0x12   :  { %24 = dma.hbm_to_vmem [thread:$0]  %s247_s1, 256, %s19_s13, [#allocation3], %s179_s22, %s179_s22, %s180_s23  }
  0x13   :  { %s181_s26 = smov [#allocation5]   ;;  %s128_s30 = scalar_lea.hbm %s248_s2, 256 }
  0x14   :  { %s30_s27 = sshll.u32 %s181_s26, 4  ;;  %p129_p8 = scmp.ne.s32.totalorder %s248_s2, %s128_s30  ;;  %s31_s27 = int_to_ptr.vmem [resolvable:$true] %s30_s27 }
  0x15   :  { %p132_p9 = scmp.lt.u32.totalorder %s128_s30, %s248_s2 }
  0x17   :  { %p134_p10 = pnand %p132_p9, %p129_p8 }
  0x19   :  { %137 = shalt.err (!%p134_p10)
}
  0x1a   :  { %s138_s8 = scalar_lea.vmem %s31_s27, 256  ;;  %p143_p12 = scmp.lt.s32.totalorder %s31_s27, %s31_s27 }
  0x1b   :  { %p139_p11 = scmp.ne.s32.totalorder %s31_s27, %s138_s8  ;;  %p144_p13 = scmp.lt.s32.totalorder %s138_s8, %s138_s8 }
  0x1d   :  { %p145_p0 = por %p144_p13, %p143_p12 }
  0x1f   :  { %p146_p1 = pnand %p145_p0, %p139_p11 }
  0x21   :  { %149 = shalt.err (!%p146_p1)
}
  0x22   :  { %36 = dma.hbm_to_vmem [thread:$0]  %s248_s2, 256, %s31_s27, [#allocation6], %s179_s22, %s179_s22, %s180_s23  }
  0x23   :  { %172 = dma.done.wait [#allocation3], 256  }
  0x24   :  { %173 = vsyncadd [#allocation3], 4294967040 }
  0x25   :  { %174 = dma.done.wait [#allocation6], 256  }
  0x26   :  { %175 = vsyncadd [#allocation6], 4294967040  ;;  %v182_v0 = vmov 0   ;;  %v97_v1 = vld [vmem:[%s246_s0] ss:$0 sm:$0xff]  ;;  %v45_v3 = vld [vmem:[#allocation2] sm:$0xff] }
  0x27   :  { %105 = vset.pattern.permute.xlu0 %v182_v0  ;;  %v98_v2 = vld [vmem:[%s246_s0 + $0x1] ss:$0 sm:$0xff]  ;;  %v47_v6 = vld [vmem:[#allocation5] sm:$0xff]  ;;  %v46_v7 = vld [vmem:[#allocation2 + $0x8] sm:$0xff]  ;;  %s183_s2 = smov [#allocation7]  }
  0x28   :  { %60 = vperm.xlu0 %105, %v97_v1   ;;  %v48_v8 = vld [vmem:[#allocation5 + $0x8] sm:$0xff]  ;;  %s87_s0 = sshll.u32 %s183_s2, 4  ;;  %s88_s0 = int_to_ptr.vmem [resolvable:$true] %s87_s0 }
  0x29   :  { %s150_s14 = scalar_lea.vmem %s88_s0, 16  ;;  %s154_s15 = scalar_lea.vmem %s88_s0, 32 }
  0x2a   :  { %p151_p2 = scmp.ne.s32.totalorder %s88_s0, %s150_s14  ;;  %p155_p3 = scmp.lt.s32.totalorder %s88_s0, %s88_s0 }
  0x2b   :  { %p156_p4 = scmp.lt.s32.totalorder %s154_s15, %s150_s14 }
  0x2c   :  { %64 = vperm.xlu0 %105, %v98_v2  }
  0x2d   :  { %p157_p5 = por %p156_p4, %p155_p3 }
  0x2f   :  { %p158_p6 = pnand %p157_p5, %p151_p2 }
  0xa7   :  { %v61_v4 = vpop.permute.xlu0 %60 }
  0xa8   :  { %v67_v5 = vmul.f32 %v61_v4, %v45_v3 }
  0xaa   :  { %v69_v10 = vadd.f32 %v67_v5, %v47_v6 }
  0xab   :  { %v65_v9 = vpop.permute.xlu0 %64 }
  0xac   :  { %v68_v11 = vmul.f32 %v65_v9, %v46_v7  ;;  %v71_v13 = vmul.f32 %v69_v10, %v69_v10 }
  0xae   :  { %v70_v12 = vadd.f32 %v68_v11, %v48_v8 }
  0xb0   :  { %v72_v14 = vmul.f32 %v70_v12, %v70_v12 }
  0xb2   :  { %v73_v15 = vadd.f32 %v72_v14, %v71_v13 }
  0xb4   :  { %v74_v16 = vrot.slane %v73_v15, 4 }
  0xb6   :  { %v75_v17 = vadd.f32 %v74_v16, %v73_v15 }
  0xb8   :  { %v76_v18 = vrot.slane %v75_v17, 2 }
  0xba   :  { %v77_v19 = vadd.f32 %v76_v18, %v75_v17 }
  0xbc   :  { %v78_v20 = vrot.slane %v77_v19, 1 }
  0xbe   :  { %v79_v21 = vadd.f32 %v78_v20, %v77_v19 }
  0xc0   :  { %80 = vst [vmem:[#allocation7] sm:$0x1] %v79_v21 }
  0xc1   :  { %161 = shalt.err (!%p158_p6)
}
  0xc2   :  { %s162_s18 = scalar_lea.hbm %s249_s3, 16 }
  0xc3   :  { %p163_p7 = scmp.ne.s32.totalorder %s249_s3, %s162_s18  ;;  %p166_p8 = scmp.lt.u32.totalorder %s162_s18, %s249_s3 }
  0xc5   :  { %p168_p9 = pnand %p166_p8, %p163_p7 }
  0xc7   :  { %171 = shalt.err (!%p168_p9)
}
  0xc8   :  { %90 = dma.vmem_to_hbm [thread:$0]  %s88_s0, 16, %s249_s3, [#allocation4]  }
  0xc9   :  { %176 = dma.done.wait [#allocation4], 16  }
  0xca   :  { %177 = vsyncadd [#allocation4], 4294967280 }
  0xcb   :  { %94 = vsyncpa [#allocation3], 1 }
  0xcc   :  { %95 = vsyncpa [#allocation6], 1 }
  0xcd   :  { %96 = vsyncpa [#allocation4], 1 }

</bundles_post_ra>
